<compile_context>
chip_gen: v7x
topology: tpu7x:2x2x1
jax: 0.10.0
libtpu: 0.0.40
codegen_flags: <defaults>
</compile_context>

<pallas_src>
import functools

import jax
import jax.numpy as jnp
from jax.experimental import pallas as pl
from jax.experimental.pallas import tpu as pltpu


def make_divisible(v, divisor=4, min_value=None):
    if min_value is None:
        min_value = divisor
    new_v = max(min_value, int(v + divisor / 2) // divisor * divisor)
    if new_v < 0.9 * v:
        new_v += divisor
    return new_v


def _choose_tile(n):
    """Images per grid step (multiple of 8) and padded batch size."""
    n8 = ((n + 7) // 8) * 8          # sublane-dense output tile
    tn = min(32, n8)                 # cap padding waste / unroll length
    # If the whole padded batch fits in one grid step, split it in two (when we
    # can keep TN a multiple of 8) so v7x's two TensorCores both get work.
    if tn == n8 and tn >= 16 and tn % 16 == 0:
        tn //= 2
    n_pad = ((n + tn - 1) // tn) * tn
    return tn, n_pad


def _ghost_neck_kernel(x_ref, w1_ref, shift_ref, w2_ref, o_ref, *, tn):
    # x_ref:     (TN, Cin, HW)  channels on sublanes, spatial (lane-dense) last
    # w1_ref:    (Cout, Cin)    conv1 1x1 weight with BN scale folded in
    # shift_ref: (Cout, 1)      folded BN shift
    # w2_ref:    (Cout, 1280)   conv2 1x1 weight (transposed), 1/HW folded in
    # o_ref:     (TN, 1280)
    cout = w1_ref.shape[0]
    hw = x_ref.shape[2]
    w1 = w1_ref[...]
    shift_b = jnp.broadcast_to(shift_ref[...], (cout, hw))   # hoisted (no per-iter bcast)

    rows = []
    for i in range(tn):                                       # static unroll over images
        yi = jnp.dot(w1, x_ref[i],
                     preferred_element_type=jnp.float32)      # (Cout, HW), HW lane-dense
        yi = jnp.maximum(yi + shift_b, 0.0)                   # BN shift + ReLU
        rows.append(jnp.sum(yi, axis=-1)[None, :])            # (1, Cout): GAP as lane reduce
    gap = jnp.concatenate(rows, axis=0)                       # (TN, Cout)

    z = jnp.dot(gap, w2_ref[...],
                preferred_element_type=jnp.float32)           # (TN, 1280), M = TN
    o_ref[...] = jnp.maximum(z, 0.0).astype(o_ref.dtype)      # final ReLU


@jax.jit
def ghost_neck_forward(x_nchw, w1, bn_gamma, bn_beta, bn_mean, bn_var, w2):
    """x_nchw: (N, Cin, H, W) float32.  Returns (N, 1280) float32.

    Dropout (p=0.2) follows in the PyTorch module; in inference mode it is the
    identity, which is what we implement here.
    """
    # TODO(synk): training-mode dropout (random mask) is not implemented; eval semantics only.
    N, Cin, H, W = x_nchw.shape
    HW = H * W
    Cout = w1.shape[0]
    C2 = w2.shape[0]
    eps = 1e-5

    TN, N_pad = _choose_tile(N)

    # Fold BN into the conv1 weight (scale) and an additive shift; fold 1/HW
    # (the GAP mean) into the conv2 weight.
    scale = bn_gamma * jax.lax.rsqrt(bn_var + eps)            # (Cout,)
    shift = (bn_beta - bn_mean * scale).reshape(Cout, 1)      # (Cout, 1)
    w1s = w1 * scale[:, None]                                 # (Cout, Cin)
    w2_t = jnp.transpose(w2) * (1.0 / HW)                     # (Cout, 1280)

    # NCHW -> (N_pad, Cin, HW): pure reshape (no transpose), pad extra images.
    x3 = x_nchw.reshape(N, Cin, HW)
    if N_pad != N:
        x3 = jnp.pad(x3, ((0, N_pad - N), (0, 0), (0, 0)))

    kernel = functools.partial(_ghost_neck_kernel, tn=TN)

    out_pad = pl.pallas_call(
        kernel,
        out_shape=jax.ShapeDtypeStruct((N_pad, C2), jnp.float32),
        grid_spec=pltpu.PrefetchScalarGridSpec(
            num_scalar_prefetch=0,
            grid=(N_pad // TN,),
            in_specs=[
                pl.BlockSpec((TN, Cin, HW), lambda n: (n, 0, 0)),
                pl.BlockSpec((Cout, Cin), lambda n: (0, 0)),   # resident
                pl.BlockSpec((Cout, 1), lambda n: (0, 0)),     # resident
                pl.BlockSpec((Cout, C2), lambda n: (0, 0)),    # resident (160 KiB)
            ],
            out_specs=pl.BlockSpec((TN, C2), lambda n: (n, 0)),
        ),
        compiler_params=pltpu.CompilerParams(
            dimension_semantics=("parallel",)),
    )(x3, w1s, shift, w2_t)
    return out_pad[:N]


def _reference(x_nchw, w1, bn_gamma, bn_beta, bn_mean, bn_var, w2):
    eps = 1e-5
    y = jnp.einsum('nchw,oc->nohw', x_nchw, w1)
    scale = bn_gamma / jnp.sqrt(bn_var + eps)
    shift = bn_beta - bn_mean * scale
    y = y * scale[None, :, None, None] + shift[None, :, None, None]
    y = jnp.maximum(y, 0.0)
    g = jnp.mean(y, axis=(2, 3))                          # (N, Cout)
    z = jnp.einsum('no,po->np', g, w2)                    # (N, 1280)
    return jnp.maximum(z, 0.0)


if __name__ == "__main__":
    # Module config (small, consistent with GhostNeck.__init__)
    in_channels = 16
    exp_size = 32
    width = 1.0
    out_channels = make_divisible(exp_size * width, 4)    # 32
    final_channels = 1280

    N, H, W = 2, 16, 16

    key = jax.random.PRNGKey(0)
    k_x, k_w1, k_g, k_b, k_m, k_v, k_w2 = jax.random.split(key, 7)

    x = jax.random.normal(k_x, (N, in_channels, H, W), dtype=jnp.float32)

    # Deterministic parameter init (shapes match the PyTorch module).
    w1 = jax.random.normal(k_w1, (out_channels, in_channels), dtype=jnp.float32) * 0.1
    bn_gamma = 1.0 + 0.05 * jax.random.normal(k_g, (out_channels,), dtype=jnp.float32)
    bn_beta = 0.05 * jax.random.normal(k_b, (out_channels,), dtype=jnp.float32)
    bn_mean = 0.1 * jax.random.normal(k_m, (out_channels,), dtype=jnp.float32)
    bn_var = jnp.abs(jax.random.normal(k_v, (out_channels,), dtype=jnp.float32)) + 0.5
    w2 = jax.random.normal(k_w2, (final_channels, out_channels), dtype=jnp.float32) * 0.05

    out = ghost_neck_forward(x, w1, bn_gamma, bn_beta, bn_mean, bn_var, w2)
    out = jax.block_until_ready(out)

    ref = _reference(x, w1, bn_gamma, bn_beta, bn_mean, bn_var, w2)
    assert out.shape == (N, final_channels)
    assert jnp.allclose(out, ref, atol=1e-4, rtol=1e-4)

    print("KERNEL_OK")
</pallas_src>

<mosaic_0001>
module attributes {stable_mosaic.version = 11 : i64} {
  func.func @_ghost_neck_kernel(%arg0: i32, %arg1: memref<8x16x256xf32, #tpu.memory_space<vmem>>, %arg2: memref<32x16xf32, #tpu.memory_space<vmem>>, %arg3: memref<32x1xf32, #tpu.memory_space<vmem>>, %arg4: memref<32x1280xf32, #tpu.memory_space<vmem>>, %arg5: memref<8x1280xf32, #tpu.memory_space<vmem>>) attributes {dimension_semantics = [#tpu.dimension_semantics<parallel>], iteration_bounds = array<i64: 1>, scalar_prefetch = 0 : i64, scratch_operands = 0 : i64, tpu.core_type = #tpu.core_type<tc>, window_params = [{transform_indices = @transform_0, window_bounds = array<i64: 8, 16, 256>}, {pipeline_mode = #tpu.pipeline_mode<synchronous>, transform_indices = @transform_1, window_bounds = array<i64: 32, 16>}, {pipeline_mode = #tpu.pipeline_mode<synchronous>, transform_indices = @transform_2, window_bounds = array<i64: 32, 1>}, {pipeline_mode = #tpu.pipeline_mode<synchronous>, transform_indices = @transform_3, window_bounds = array<i64: 32, 1280>}, {transform_indices = @transform_4, window_bounds = array<i64: 8, 1280>}]} {
    %c0 = arith.constant 0 : index
    %c0_0 = arith.constant 0 : index
    %0 = vector.load %arg2[%c0, %c0_0] : memref<32x16xf32, #tpu.memory_space<vmem>>, vector<32x16xf32>
    %c0_1 = arith.constant 0 : index
    %c0_2 = arith.constant 0 : index
    %1 = vector.load %arg3[%c0_1, %c0_2] : memref<32x1xf32, #tpu.memory_space<vmem>>, vector<32x1xf32>
    %2 = vector.shape_cast %1 : vector<32x1xf32> to vector<32x1xf32>
    %3 = vector.broadcast %2 : vector<32x1xf32> to vector<32x256xf32>
    %c0_3 = arith.constant 0 : index
    %c0_4 = arith.constant 0 : index
    %c0_5 = arith.constant 0 : index
    %4 = vector.load %arg1[%c0_3, %c0_4, %c0_5] : memref<8x16x256xf32, #tpu.memory_space<vmem>>, vector<1x16x256xf32>
    %5 = vector.shape_cast %4 : vector<1x16x256xf32> to vector<16x256xf32>
    %cst = arith.constant dense<0.000000e+00> : vector<32x256xf32>
    %6 = tpu.matmul %0, %5, %cst {dimension_numbers = #tpu.dot_dimension_numbers<[1], [0], [0], [1], [0, 0, 1, 1], [], []>} : vector<32x16xf32>, vector<16x256xf32>, vector<32x256xf32> -> vector<32x256xf32>
    %7 = arith.addf %6, %3 : vector<32x256xf32>
    %cst_6 = arith.constant 0.000000e+00 : f32
    %8 = vector.broadcast %cst_6 : f32 to vector<32x256xf32>
    %9 = arith.maximumf %7, %8 : vector<32x256xf32>
    %cst_7 = arith.constant dense<0.000000e+00> : vector<32xf32>
    %10 = vector.multi_reduction <add>, %9, %cst_7 [1] : vector<32x256xf32> to vector<32xf32>
    %11 = vector.shape_cast %10 : vector<32xf32> to vector<1x32xf32>
    %c1 = arith.constant 1 : index
    %c0_8 = arith.constant 0 : index
    %c0_9 = arith.constant 0 : index
    %12 = vector.load %arg1[%c1, %c0_8, %c0_9] : memref<8x16x256xf32, #tpu.memory_space<vmem>>, vector<1x16x256xf32>
    %13 = vector.shape_cast %12 : vector<1x16x256xf32> to vector<16x256xf32>
    %cst_10 = arith.constant dense<0.000000e+00> : vector<32x256xf32>
    %14 = tpu.matmul %0, %13, %cst_10 {dimension_numbers = #tpu.dot_dimension_numbers<[1], [0], [0], [1], [0, 0, 1, 1], [], []>} : vector<32x16xf32>, vector<16x256xf32>, vector<32x256xf32> -> vector<32x256xf32>
    %15 = arith.addf %14, %3 : vector<32x256xf32>
    %cst_11 = arith.constant 0.000000e+00 : f32
    %16 = vector.broadcast %cst_11 : f32 to vector<32x256xf32>
    %17 = arith.maximumf %15, %16 : vector<32x256xf32>
    %cst_12 = arith.constant dense<0.000000e+00> : vector<32xf32>
    %18 = vector.multi_reduction <add>, %17, %cst_12 [1] : vector<32x256xf32> to vector<32xf32>
    %19 = vector.shape_cast %18 : vector<32xf32> to vector<1x32xf32>
    %c2 = arith.constant 2 : index
    %c0_13 = arith.constant 0 : index
    %c0_14 = arith.constant 0 : index
    %20 = vector.load %arg1[%c2, %c0_13, %c0_14] : memref<8x16x256xf32, #tpu.memory_space<vmem>>, vector<1x16x256xf32>
    %21 = vector.shape_cast %20 : vector<1x16x256xf32> to vector<16x256xf32>
    %cst_15 = arith.constant dense<0.000000e+00> : vector<32x256xf32>
    %22 = tpu.matmul %0, %21, %cst_15 {dimension_numbers = #tpu.dot_dimension_numbers<[1], [0], [0], [1], [0, 0, 1, 1], [], []>} : vector<32x16xf32>, vector<16x256xf32>, vector<32x256xf32> -> vector<32x256xf32>
    %23 = arith.addf %22, %3 : vector<32x256xf32>
    %cst_16 = arith.constant 0.000000e+00 : f32
    %24 = vector.broadcast %cst_16 : f32 to vector<32x256xf32>
    %25 = arith.maximumf %23, %24 : vector<32x256xf32>
    %cst_17 = arith.constant dense<0.000000e+00> : vector<32xf32>
    %26 = vector.multi_reduction <add>, %25, %cst_17 [1] : vector<32x256xf32> to vector<32xf32>
    %27 = vector.shape_cast %26 : vector<32xf32> to vector<1x32xf32>
    %c3 = arith.constant 3 : index
    %c0_18 = arith.constant 0 : index
    %c0_19 = arith.constant 0 : index
    %28 = vector.load %arg1[%c3, %c0_18, %c0_19] : memref<8x16x256xf32, #tpu.memory_space<vmem>>, vector<1x16x256xf32>
    %29 = vector.shape_cast %28 : vector<1x16x256xf32> to vector<16x256xf32>
    %cst_20 = arith.constant dense<0.000000e+00> : vector<32x256xf32>
    %30 = tpu.matmul %0, %29, %cst_20 {dimension_numbers = #tpu.dot_dimension_numbers<[1], [0], [0], [1], [0, 0, 1, 1], [], []>} : vector<32x16xf32>, vector<16x256xf32>, vector<32x256xf32> -> vector<32x256xf32>
    %31 = arith.addf %30, %3 : vector<32x256xf32>
    %cst_21 = arith.constant 0.000000e+00 : f32
    %32 = vector.broadcast %cst_21 : f32 to vector<32x256xf32>
    %33 = arith.maximumf %31, %32 : vector<32x256xf32>
    %cst_22 = arith.constant dense<0.000000e+00> : vector<32xf32>
    %34 = vector.multi_reduction <add>, %33, %cst_22 [1] : vector<32x256xf32> to vector<32xf32>
    %35 = vector.shape_cast %34 : vector<32xf32> to vector<1x32xf32>
    %c4 = arith.constant 4 : index
    %c0_23 = arith.constant 0 : index
    %c0_24 = arith.constant 0 : index
    %36 = vector.load %arg1[%c4, %c0_23, %c0_24] : memref<8x16x256xf32, #tpu.memory_space<vmem>>, vector<1x16x256xf32>
    %37 = vector.shape_cast %36 : vector<1x16x256xf32> to vector<16x256xf32>
    %cst_25 = arith.constant dense<0.000000e+00> : vector<32x256xf32>
    %38 = tpu.matmul %0, %37, %cst_25 {dimension_numbers = #tpu.dot_dimension_numbers<[1], [0], [0], [1], [0, 0, 1, 1], [], []>} : vector<32x16xf32>, vector<16x256xf32>, vector<32x256xf32> -> vector<32x256xf32>
    %39 = arith.addf %38, %3 : vector<32x256xf32>
    %cst_26 = arith.constant 0.000000e+00 : f32
    %40 = vector.broadcast %cst_26 : f32 to vector<32x256xf32>
    %41 = arith.maximumf %39, %40 : vector<32x256xf32>
    %cst_27 = arith.constant dense<0.000000e+00> : vector<32xf32>
    %42 = vector.multi_reduction <add>, %41, %cst_27 [1] : vector<32x256xf32> to vector<32xf32>
    %43 = vector.shape_cast %42 : vector<32xf32> to vector<1x32xf32>
    %c5 = arith.constant 5 : index
    %c0_28 = arith.constant 0 : index
    %c0_29 = arith.constant 0 : index
    %44 = vector.load %arg1[%c5, %c0_28, %c0_29] : memref<8x16x256xf32, #tpu.memory_space<vmem>>, vector<1x16x256xf32>
    %45 = vector.shape_cast %44 : vector<1x16x256xf32> to vector<16x256xf32>
    %cst_30 = arith.constant dense<0.000000e+00> : vector<32x256xf32>
    %46 = tpu.matmul %0, %45, %cst_30 {dimension_numbers = #tpu.dot_dimension_numbers<[1], [0], [0], [1], [0, 0, 1, 1], [], []>} : vector<32x16xf32>, vector<16x256xf32>, vector<32x256xf32> -> vector<32x256xf32>
    %47 = arith.addf %46, %3 : vector<32x256xf32>
    %cst_31 = arith.constant 0.000000e+00 : f32
    %48 = vector.broadcast %cst_31 : f32 to vector<32x256xf32>
    %49 = arith.maximumf %47, %48 : vector<32x256xf32>
    %cst_32 = arith.constant dense<0.000000e+00> : vector<32xf32>
    %50 = vector.multi_reduction <add>, %49, %cst_32 [1] : vector<32x256xf32> to vector<32xf32>
    %51 = vector.shape_cast %50 : vector<32xf32> to vector<1x32xf32>
    %c6 = arith.constant 6 : index
    %c0_33 = arith.constant 0 : index
    %c0_34 = arith.constant 0 : index
    %52 = vector.load %arg1[%c6, %c0_33, %c0_34] : memref<8x16x256xf32, #tpu.memory_space<vmem>>, vector<1x16x256xf32>
    %53 = vector.shape_cast %52 : vector<1x16x256xf32> to vector<16x256xf32>
    %cst_35 = arith.constant dense<0.000000e+00> : vector<32x256xf32>
    %54 = tpu.matmul %0, %53, %cst_35 {dimension_numbers = #tpu.dot_dimension_numbers<[1], [0], [0], [1], [0, 0, 1, 1], [], []>} : vector<32x16xf32>, vector<16x256xf32>, vector<32x256xf32> -> vector<32x256xf32>
    %55 = arith.addf %54, %3 : vector<32x256xf32>
    %cst_36 = arith.constant 0.000000e+00 : f32
    %56 = vector.broadcast %cst_36 : f32 to vector<32x256xf32>
    %57 = arith.maximumf %55, %56 : vector<32x256xf32>
    %cst_37 = arith.constant dense<0.000000e+00> : vector<32xf32>
    %58 = vector.multi_reduction <add>, %57, %cst_37 [1] : vector<32x256xf32> to vector<32xf32>
    %59 = vector.shape_cast %58 : vector<32xf32> to vector<1x32xf32>
    %c7 = arith.constant 7 : index
    %c0_38 = arith.constant 0 : index
    %c0_39 = arith.constant 0 : index
    %60 = vector.load %arg1[%c7, %c0_38, %c0_39] : memref<8x16x256xf32, #tpu.memory_space<vmem>>, vector<1x16x256xf32>
    %61 = vector.shape_cast %60 : vector<1x16x256xf32> to vector<16x256xf32>
    %cst_40 = arith.constant dense<0.000000e+00> : vector<32x256xf32>
    %62 = tpu.matmul %0, %61, %cst_40 {dimension_numbers = #tpu.dot_dimension_numbers<[1], [0], [0], [1], [0, 0, 1, 1], [], []>} : vector<32x16xf32>, vector<16x256xf32>, vector<32x256xf32> -> vector<32x256xf32>
    %63 = arith.addf %62, %3 : vector<32x256xf32>
    %cst_41 = arith.constant 0.000000e+00 : f32
    %64 = vector.broadcast %cst_41 : f32 to vector<32x256xf32>
    %65 = arith.maximumf %63, %64 : vector<32x256xf32>
    %cst_42 = arith.constant dense<0.000000e+00> : vector<32xf32>
    %66 = vector.multi_reduction <add>, %65, %cst_42 [1] : vector<32x256xf32> to vector<32xf32>
    %67 = vector.shape_cast %66 : vector<32xf32> to vector<1x32xf32>
    %68 = tpu.concatenate %11, %19, %27, %35, %43, %51, %59, %67 in 0 : vector<1x32xf32>, vector<1x32xf32>, vector<1x32xf32>, vector<1x32xf32>, vector<1x32xf32>, vector<1x32xf32>, vector<1x32xf32>, vector<1x32xf32> -> vector<8x32xf32>
    %c0_43 = arith.constant 0 : index
    %c0_44 = arith.constant 0 : index
    %69 = vector.load %arg4[%c0_43, %c0_44] : memref<32x1280xf32, #tpu.memory_space<vmem>>, vector<32x1280xf32>
    %cst_45 = arith.constant dense<0.000000e+00> : vector<8x1280xf32>
    %70 = tpu.matmul %68, %69, %cst_45 {dimension_numbers = #tpu.dot_dimension_numbers<[1], [0], [0], [1], [0, 0, 1, 1], [], []>} : vector<8x32xf32>, vector<32x1280xf32>, vector<8x1280xf32> -> vector<8x1280xf32>
    %cst_46 = arith.constant 0.000000e+00 : f32
    %71 = vector.broadcast %cst_46 : f32 to vector<8x1280xf32>
    %72 = arith.maximumf %70, %71 : vector<8x1280xf32>
    %c0_47 = arith.constant 0 : index
    %c0_48 = arith.constant 0 : index
    %73 = vector.load %arg5[%c0_47, %c0_48] : memref<8x1280xf32, #tpu.memory_space<vmem>>, vector<8x1280xf32>
    tpu.vector_store %arg5[%c0_47, %c0_48], %72 {strides = array<i32>} : memref<8x1280xf32, #tpu.memory_space<vmem>>, vector<8x1280xf32>,
    return
  }
  func.func @transform_0(%arg0: i32) -> (i32, i32, i32) {
    %c0_i32 = arith.constant 0 : i32
    %c0_i32_0 = arith.constant 0 : i32
    %c0_i32_1 = arith.constant 0 : i32
    return %arg0, %c0_i32, %c0_i32_0 : i32, i32, i32
  }
  func.func @transform_1(%arg0: i32) -> (i32, i32) {
    %c0_i32 = arith.constant 0 : i32
    %c0_i32_0 = arith.constant 0 : i32
    %c0_i32_1 = arith.constant 0 : i32
    return %c0_i32, %c0_i32_0 : i32, i32
  }
  func.func @transform_2(%arg0: i32) -> (i32, i32) {
    %c0_i32 = arith.constant 0 : i32
    %c0_i32_0 = arith.constant 0 : i32
    %c0_i32_1 = arith.constant 0 : i32
    return %c0_i32, %c0_i32_0 : i32, i32
  }
  func.func @transform_3(%arg0: i32) -> (i32, i32) {
    %c0_i32 = arith.constant 0 : i32
    %c0_i32_0 = arith.constant 0 : i32
    %c0_i32_1 = arith.constant 0 : i32
    return %c0_i32, %c0_i32_0 : i32, i32
  }
  func.func @transform_4(%arg0: i32) -> (i32, i32) {
    %c0_i32 = arith.constant 0 : i32
    %c0_i32_0 = arith.constant 0 : i32
    return %arg0, %c0_i32 : i32, i32
  }
}

</mosaic_0001>

<bundles_post_ra>
// kernel: ghost_neck_forward.1
= control target key start
LH: loop header
LB: loop body
LE: loop exit
PB: predicated region body
PF: predicated region fallthrough
CT: control target
= control target key end

     0   :  { %v1749_v3 = vmov 0.0   ;;  %v1750_v6 = vmov 0   ;;  %vm49_vm0 = vcmask 130048   ;;  %vm984_vm1 = vcmask 130112   ;;  %s2342_s0 = inlined_call_operand.vmem [shape: f32[8,16,256], index: 0, kind: input, shape index: {}]   ;;  %s2343_s1 = inlined_call_operand.vmem [shape: f32[32,16], index: 1, kind: input, shape index: {}]   ;;  %s2344_s2 = inlined_call_operand.vmem [shape: f32[32,1], index: 2, kind: input, shape index: {}]   ;;  %s2345_s3 = inlined_call_operand.vmem [shape: f32[32,1280], index: 3, kind: input, shape index: {}]   ;;  %s2346_s4 = inlined_call_operand.vmem [shape: f32[8,1280], index: 4, kind: output, shape index: {}]  }
   0x1   :  { %v46_v0 = vld [vmem:[%s2342_s0 + $0x8] sm:$0xff]  ;;  %v48_v1 = vld [vmem:[%s2342_s0 + $0x18] sm:$0xff]  ;;  %v45_v2 = vld [vmem:[%s2342_s0] sm:$0xff]  ;;  %126 = vmatprep.mubr.f32.mxu0 %v1749_v3  ;;  %144 = vmatprep.mubr.f32.mxu1 %v1749_v3  ;;  %vm991_vm2 = vcmask 195712   ;;  %vm998_vm3 = vcmask 261312   ;;  %vm1169_vm4 = vcmask 1040384  }
   0x2   :  { %v1671_v4 = vpack.c.bf16 %v48_v1, %v46_v0  ;;  %v47_v5 = vld [vmem:[%s2342_s0 + $0x10] sm:$0xff]  ;;  %1748 = vset.pattern.permute.xlu1 %v1750_v6  ;;  %1747 = vset.pattern.permute.xlu0 %v1750_v6  ;;  %v1793_v8 = vld [vmem:[%s2343_s1] sm:$0xff]  ;;  %v1611_v9 = vld [vmem:[%s2342_s0 + $0x28] sm:$0xff]  ;;  %vm1171_vm5 = vcmask 1041408   ;;  %vm1173_vm6 = vcmask 1042432   ;;  %vm1175_vm7 = vcmask 1043456  }
   0x3   :  { %v1673_v7 = vpack.c.bf16 %v47_v5, %v45_v2  ;;  %v1613_v10 = vld [vmem:[%s2342_s0 + $0x38] sm:$0xff]  ;;  %v1619_v11 = vld [vmem:[%s2342_s0 + $0x48] sm:$0xff]  ;;  %v1610_v14 = vld [vmem:[%s2342_s0 + $0x20] sm:$0xff]  ;;  %vm1177_vm8 = vcmask 1044480   ;;  %vm1179_vm9 = vcmask 1045504   ;;  %vm1181_vm10 = vcmask 1046528  }
   0x4   :  { %1672 = vmatprep.subr.bf16.mxu0 %v1671_v4  ;;  %1743 = vmatprep.subr.bf16.mxu1 %v1671_v4  ;;  %v1675_v12 = vpack.c.bf16 %v1613_v10, %v1611_v9  ;;  %v1621_v13 = vld [vmem:[%s2342_s0 + $0x58] sm:$0xff]  ;;  %v1612_v15 = vld [vmem:[%s2342_s0 + $0x30] sm:$0xff]  ;;  %v1618_v19 = vld [vmem:[%s2342_s0 + $0x40] sm:$0xff]  ;;  %vm1223_vm11 = vcmask 261120  }
   0x5   :  { %1674 = vmatpush1.bf16.msra.mxu0 %v1673_v7  ;;  %1744 = vmatpush1.bf16.msra.mxu1 %v1673_v7  ;;  %v1816_v16 = vld [vmem:[%s2343_s1 + $0x18] sm:$0xff]  ;;  %v1679_v17 = vpack.c.bf16 %v1621_v13, %v1619_v11  ;;  %v1677_v18 = vpack.c.bf16 %v1612_v15, %v1610_v14  ;;  %v1620_v20 = vld [vmem:[%s2342_s0 + $0x50] sm:$0xff]  ;;  %v1627_v22 = vld [vmem:[%s2342_s0 + $0x68] sm:$0xff] }
   0x6   :  { %1676 = vmatprep.subr.bf16.mxu1 %v1675_v12  ;;  %v1681_v21 = vpack.c.bf16 %v1620_v20, %v1618_v19  ;;  %v1629_v23 = vld [vmem:[%s2342_s0 + $0x78] sm:$0xff]  ;;  %v1626_v24 = vld [vmem:[%s2342_s0 + $0x60] sm:$0xff]  ;;  %v1628_v26 = vld [vmem:[%s2342_s0 + $0x70] sm:$0xff] }
   0x7   :  { %1680 = vmatprep.subr.bf16.mxu0 %v1679_v17  ;;  %v1683_v25 = vpack.c.bf16 %v1629_v23, %v1627_v22  ;;  %v1635_v27 = vld [vmem:[%s2342_s0 + $0x88] sm:$0xff]  ;;  %v1637_v28 = vld [vmem:[%s2342_s0 + $0x98] sm:$0xff]  ;;  %v1685_v30 = vpack.c.bf16 %v1628_v26, %v1626_v24  ;;  %v1867_v35 = vld [vmem:[%s2343_s1 + $0x10] sm:$0xff] }
   0x8   :  { %1606 = vmatmul.mubr.msk.f32.vlgmr.msra.gmra.mrb[0].mxu0 %vm49_vm0, %v1793_v8  ;;  %1609 = vmatmul.mubr.msk.f32.vlgmr.msra.gmra.mrb[0].mxu1 %vm49_vm0, %v1816_v16  ;;  %v1849_v29 = vld [vmem:[%s2343_s1 + $0x8] sm:$0xff]  ;;  %v1687_v31 = vpack.c.bf16 %v1637_v28, %v1635_v27  ;;  %v1645_v33 = vld [vmem:[%s2342_s0 + $0xb8] sm:$0xff]  ;;  %v23_v36 = vld [vmem:[%s2344_s2 + $0x10] sm:$0xff] }
   0x9   :  { %1678 = vmatpush1.bf16.msra.mxu1 %v1677_v18  ;;  %1682 = vmatpush1.bf16.msra.mxu0 %v1681_v21  ;;  %v1643_v32 = vld [vmem:[%s2342_s0 + $0xa8] sm:$0xff]  ;;  %v21_v37 = vld [vmem:[%s2344_s2] sm:$0xff]  ;;  %v1636_v39 = vld [vmem:[%s2342_s0 + $0x90] sm:$0xff] }
   0xa   :  { %132 = vmatprep.mubr.f32.mxu0 %v1749_v3  ;;  %240 = vmatprep.mubr.f32.mxu1 %v1749_v3  ;;  %v1691_v34 = vpack.c.bf16 %v1645_v33, %v1643_v32  ;;  %v1634_v38 = vld [vmem:[%s2342_s0 + $0x80] sm:$0xff]  ;;  %v1651_v40 = vld [vmem:[%s2342_s0 + $0xc8] sm:$0xff]  ;;  %v1653_v41 = vld [vmem:[%s2342_s0 + $0xd8] sm:$0xff] }
   0xb   :  { %1684 = vmatprep.subr.bf16.mxu1 %v1683_v25  ;;  %1688 = vmatprep.subr.bf16.mxu0 %v1687_v31  ;;  %v24_v42 = vld [vmem:[%s2344_s2 + $0x18] sm:$0xff]  ;;  %v22_v43 = vld [vmem:[%s2344_s2 + $0x8] sm:$0xff]  ;;  %v1689_v44 = vpack.c.bf16 %v1636_v39, %v1634_v38  ;;  %v1695_v45 = vpack.c.bf16 %v1653_v41, %v1651_v40  ;;  %v1642_v46 = vld [vmem:[%s2342_s0 + $0xa0] sm:$0xff] }
   0xc   :  { %1607 = vmatmul.mubr.msk.f32.gmra.mrb[2].mxu0 %vm49_vm0, %v1849_v29  ;;  %1614 = vmatmul.mubr.msk.f32.vlgmr.msra.gmra.mrb[2].mxu1 %vm49_vm0, %v1793_v8  ;;  %v1644_v47 = vld [vmem:[%s2342_s0 + $0xb0] sm:$0xff]  ;;  %v1659_v48 = vld [vmem:[%s2342_s0 + $0xe8] sm:$0xff]  ;;  %v1661_v49 = vld [vmem:[%s2342_s0 + $0xf8] sm:$0xff] }
   0xd   :  { %1686 = vmatpush1.bf16.msra.mxu1 %v1685_v30  ;;  %138 = vmatprep.mubr.f32.mxu0 %v1749_v3  ;;  %v1693_v50 = vpack.c.bf16 %v1644_v47, %v1642_v46  ;;  %v1699_v51 = vpack.c.bf16 %v1661_v49, %v1659_v48  ;;  %v1650_v52 = vld [vmem:[%s2342_s0 + $0xc0] sm:$0xff]  ;;  %v1652_v53 = vld [vmem:[%s2342_s0 + $0xd0] sm:$0xff] }
   0xe   :  { %246 = vmatprep.mubr.f32.mxu1 %v1749_v3  ;;  %1692 = vmatprep.subr.bf16.mxu1 %v1691_v34  ;;  %v1697_v54 = vpack.c.bf16 %v1652_v53, %v1650_v52  ;;  %v1658_v55 = vld [vmem:[%s2342_s0 + $0xe0] sm:$0xff]  ;;  %v1660_v56 = vld [vmem:[%s2342_s0 + $0xf0] sm:$0xff] }
   0xf   :  { %37 = vperm.xlu1 %1748, %v23_v36   ;;  %27 = vperm.xlu0 %1747, %v21_v37   ;;  %v1701_v57 = vpack.c.bf16 %v1660_v56, %v1658_v55 }
  0x10   :  { %1608 = vmatmul.mubr.msk.f32.gmra.mrb[4].mxu0 %vm49_vm0, %v1867_v35  ;;  %1615 = vmatmul.mubr.msk.f32.gmra.mrb[4].mxu1 %vm49_vm0, %v1849_v29 }
  0x11   :  { %252 = vmatprep.mubr.f32.mxu1 %v1749_v3  ;;  %354 = vmatprep.mubr.f32.mxu0 %v1749_v3 }
  0x13   :  { %42 = vperm.xlu1 %1748, %v24_v42   ;;  %32 = vperm.xlu0 %1747, %v22_v43  }
  0x14   :  { %1616 = vmatmul.mubr.msk.f32.gmra.mrb[6].mxu1 %vm49_vm0, %v1867_v35  ;;  %1622 = vmatmul.mubr.msk.f32.vlgmr.msra.gmra.mrb[6].mxu0 %vm49_vm0, %v1793_v8 }
  0x15   :  { %258 = vmatprep.mubr.f32.mxu1 %v1749_v3  ;;  %360 = vmatprep.mubr.f32.mxu0 %v1749_v3 }
  0x16   :  { %1690 = vmatpush1.bf16.msra.mxu0 %v1689_v44 }
  0x17   :  { %1696 = vmatprep.subr.bf16.mxu0 %v1695_v45 }
  0x18   :  { %1617 = vmatmul.mubr.msk.f32.gmra.mrb[8].mxu1 %vm49_vm0, %v1816_v16  ;;  %1623 = vmatmul.mubr.msk.f32.gmra.mrb[8].mxu0 %vm49_vm0, %v1849_v29 }
  0x19   :  { %366 = vmatprep.mubr.f32.mxu0 %v1749_v3  ;;  %468 = vmatprep.mubr.f32.mxu1 %v1749_v3 }
  0x1c   :  { %1624 = vmatmul.mubr.msk.f32.gmra.mrb[10].mxu0 %vm49_vm0, %v1867_v35  ;;  %1630 = vmatmul.mubr.msk.f32.vlgmr.msra.gmra.mrb[10].mxu1 %vm49_vm0, %v1793_v8 }
  0x1d   :  { %1694 = vmatpush1.bf16.msra.mxu1 %v1693_v50  ;;  %372 = vmatprep.mubr.f32.mxu0 %v1749_v3 }
  0x1e   :  { %474 = vmatprep.mubr.f32.mxu1 %v1749_v3  ;;  %1700 = vmatprep.subr.bf16.mxu1 %v1699_v51 }
  0x20   :  { %1625 = vmatmul.mubr.msk.f32.gmra.mrb[12].mxu0 %vm49_vm0, %v1816_v16  ;;  %1631 = vmatmul.mubr.msk.f32.gmra.mrb[12].mxu1 %vm49_vm0, %v1849_v29 }
  0x21   :  { %480 = vmatprep.mubr.f32.mxu1 %v1749_v3  ;;  %582 = vmatprep.mubr.f32.mxu0 %v1749_v3 }
  0x24   :  { %1632 = vmatmul.mubr.msk.f32.gmra.mrb[14].mxu1 %vm49_vm0, %v1867_v35  ;;  %1638 = vmatmul.mubr.msk.f32.vlgmr.msra.gmra.mrb[14].mxu0 %vm49_vm0, %v1793_v8 }
  0x25   :  { %486 = vmatprep.mubr.f32.mxu1 %v1749_v3  ;;  %588 = vmatprep.mubr.f32.mxu0 %v1749_v3 }
  0x26   :  { %1698 = vmatpush1.bf16.msra.mxu0 %v1697_v54 }
  0x28   :  { %1633 = vmatmul.mubr.msk.f32.gmra.mrb[16].mxu1 %vm49_vm0, %v1816_v16  ;;  %1639 = vmatmul.mubr.msk.f32.gmra.mrb[16].mxu0 %vm49_vm0, %v1849_v29 }
  0x29   :  { %594 = vmatprep.mubr.f32.mxu0 %v1749_v3  ;;  %696 = vmatprep.mubr.f32.mxu1 %v1749_v3 }
  0x2c   :  { %1640 = vmatmul.mubr.msk.f32.gmra.mrb[18].mxu0 %vm49_vm0, %v1867_v35  ;;  %1646 = vmatmul.mubr.msk.f32.vlgmr.msra.gmra.mrb[18].mxu1 %vm49_vm0, %v1793_v8 }
  0x2d   :  { %1702 = vmatpush1.bf16.msra.mxu1 %v1701_v57  ;;  %600 = vmatprep.mubr.f32.mxu0 %v1749_v3 }
  0x2e   :  { %702 = vmatprep.mubr.f32.mxu1 %v1749_v3 }
  0x30   :  { %1641 = vmatmul.mubr.msk.f32.gmra.mrb[20].mxu0 %vm49_vm0, %v1816_v16  ;;  %1647 = vmatmul.mubr.msk.f32.gmra.mrb[20].mxu1 %vm49_vm0, %v1849_v29 }
  0x31   :  { %708 = vmatprep.mubr.f32.mxu1 %v1749_v3  ;;  %810 = vmatprep.mubr.f32.mxu0 %v1749_v3 }
  0x34   :  { %1648 = vmatmul.mubr.msk.f32.gmra.mrb[22].mxu1 %vm49_vm0, %v1867_v35  ;;  %1654 = vmatmul.mubr.msk.f32.vlgmr.msra.gmra.mrb[22].mxu0 %vm49_vm0, %v1793_v8 }
  0x35   :  { %714 = vmatprep.mubr.f32.mxu1 %v1749_v3  ;;  %816 = vmatprep.mubr.f32.mxu0 %v1749_v3 }
  0x38   :  { %1649 = vmatmul.mubr.msk.f32.gmra.mrb[24].mxu1 %vm49_vm0, %v1816_v16  ;;  %1655 = vmatmul.mubr.msk.f32.gmra.mrb[24].mxu0 %vm49_vm0, %v1849_v29 }
  0x39   :  { %822 = vmatprep.mubr.f32.mxu0 %v1749_v3  ;;  %924 = vmatprep.mubr.f32.mxu1 %v1749_v3 }
  0x3c   :  { %1656 = vmatmul.mubr.msk.f32.gmra.mrb[26].mxu0 %vm49_vm0, %v1867_v35  ;;  %1662 = vmatmul.mubr.msk.f32.vlgmr.msra.gmra.mrb[26].mxu1 %vm49_vm0, %v1793_v8 }
  0x3d   :  { %828 = vmatprep.mubr.f32.mxu0 %v1749_v3  ;;  %930 = vmatprep.mubr.f32.mxu1 %v1749_v3 }
  0x40   :  { %1657 = vmatmul.mubr.msk.f32.gmra.mrb[28].mxu0 %vm49_vm0, %v1816_v16  ;;  %1663 = vmatmul.mubr.msk.f32.gmra.mrb[28].mxu1 %vm49_vm0, %v1849_v29 }
  0x41   :  { %936 = vmatprep.mubr.f32.mxu1 %v1749_v3  ;;  %1291 = vmatprep.mubr.f32.mxu0 %v1749_v3 }
  0x44   :  { %1664 = vmatmul.mubr.msk.f32.gmra.mrb[30].mxu1 %vm49_vm0, %v1867_v35 }
  0x45   :  { %942 = vmatprep.mubr.f32.mxu1 %v1749_v3 }
  0x48   :  { %1665 = vmatmul.mubr.msk.f32.gmra.mrb[32].mxu1 %vm49_vm0, %v1816_v16 }
  0x49   :  { %1362 = vmatprep.mubr.f32.mxu1 %v1749_v3 }
  0x8e   :  { %v2002_v58 = vpop.permute.xlu1 %37  ;;  %v2004_v59 = vpop.permute.xlu0 %27 }
  0x92   :  { %v2006_v60 = vpop.permute.xlu1 %42  ;;  %v2012_v7 = vpop.permute.xlu0 %32 }
  0xdb   :  { %v128_v61 = vpop.f32.mrb[0].mxu0  ;;  %v146_v62 = vpop.f32.mrb[0].mxu1 }
  0xdc   :  { %v129_v63 = vadd.f32 %v128_v61, %v2004_v59  ;;  %v130_v0 = vpop.f32.mrb[1].mxu0  ;;  %v148_v1 = vpop.f32.mrb[1].mxu1  ;;  %v147_v2 = vadd.f32 %v146_v62, %v2006_v60 }
  0xdd   :  { %v131_v4 = vadd.f32 %v130_v0, %v2004_v59  ;;  %v149_v5 = vadd.f32 %v148_v1, %v2006_v60 }
  0xde   :  { %v151_v6 = vmax.f32 %v129_v63, 0.0  ;;  %v157_v8 = vmax.f32 %v147_v2, 0.0 }
  0xdf   :  { %v152_v9 = vmax.f32 %v131_v4, 0.0  ;;  %v158_v10 = vmax.f32 %v149_v5, 0.0  ;;  %v134_v11 = vpop.f32.mrb[2].mxu0  ;;  %v242_v12 = vpop.f32.mrb[2].mxu1 }
  0xe0   :  { %v135_v13 = vadd.f32 %v134_v11, %v2012_v7  ;;  %v243_v14 = vadd.f32 %v242_v12, %v2004_v59  ;;  %v136_v15 = vpop.f32.mrb[3].mxu0  ;;  %v244_v16 = vpop.f32.mrb[3].mxu1 }
  0xe1   :  { %v137_v17 = vadd.f32 %v136_v15, %v2012_v7  ;;  %v245_v18 = vadd.f32 %v244_v16, %v2004_v59  ;;  %v168_v19 = vadd.f32 %v158_v10, %v157_v8  ;;  %v159_v20 = vadd.f32 %v152_v9, %v151_v6 }
  0xe2   :  { %v153_v21 = vmax.f32 %v135_v13, 0.0  ;;  %v265_v22 = vmax.f32 %v243_v14, 0.0 }
  0xe3   :  { %v154_v23 = vmax.f32 %v137_v17, 0.0  ;;  %v266_v24 = vmax.f32 %v245_v18, 0.0  ;;  %v248_v25 = vpop.f32.mrb[4].mxu1  ;;  %169 = vadd.xlane.f32.xlu1 %v168_v19  ;;  %v140_v26 = vpop.f32.mrb[4].mxu0  ;;  %160 = vadd.xlane.f32.xlu0 %v159_v20 }
  0xe4   :  { %v249_v27 = vadd.f32 %v248_v25, %v2012_v7  ;;  %v141_v28 = vadd.f32 %v140_v26, %v2002_v58  ;;  %v142_v29 = vpop.f32.mrb[5].mxu0  ;;  %v250_v30 = vpop.f32.mrb[5].mxu1 }
  0xe5   :  { %v143_v31 = vadd.f32 %v142_v29, %v2002_v58  ;;  %v251_v32 = vadd.f32 %v250_v30, %v2012_v7  ;;  %v162_v33 = vadd.f32 %v154_v23, %v153_v21  ;;  %v273_v34 = vadd.f32 %v266_v24, %v265_v22 }
  0xe6   :  { %v267_v35 = vmax.f32 %v249_v27, 0.0  ;;  %v155_v36 = vmax.f32 %v141_v28, 0.0 }
  0xe7   :  { %v156_v37 = vmax.f32 %v143_v31, 0.0  ;;  %v268_v38 = vmax.f32 %v251_v32, 0.0  ;;  %v254_v39 = vpop.f32.mrb[6].mxu1  ;;  %v356_v40 = vpop.f32.mrb[6].mxu0  ;;  %163 = vadd.xlane.f32.xlu1 %v162_v33  ;;  %274 = vadd.xlane.f32.xlu0 %v273_v34 }
  0xe8   :  { %v255_v41 = vadd.f32 %v254_v39, %v2002_v58  ;;  %v357_v42 = vadd.f32 %v356_v40, %v2004_v59  ;;  %v256_v43 = vpop.f32.mrb[7].mxu1  ;;  %v358_v44 = vpop.f32.mrb[7].mxu0 }
  0xe9   :  { %v257_v45 = vadd.f32 %v256_v43, %v2002_v58  ;;  %v359_v46 = vadd.f32 %v358_v44, %v2004_v59  ;;  %v165_v47 = vadd.f32 %v156_v37, %v155_v36  ;;  %v276_v48 = vadd.f32 %v268_v38, %v267_v35 }
  0xea   :  { %v269_v49 = vmax.f32 %v255_v41, 0.0  ;;  %v379_v50 = vmax.f32 %v357_v42, 0.0 }
  0xeb   :  { %v270_v51 = vmax.f32 %v257_v45, 0.0  ;;  %v380_v52 = vmax.f32 %v359_v46, 0.0  ;;  %v260_v53 = vpop.f32.mrb[8].mxu1  ;;  %v362_v54 = vpop.f32.mrb[8].mxu0  ;;  %166 = vadd.xlane.f32.xlu1 %v165_v47  ;;  %277 = vadd.xlane.f32.xlu0 %v276_v48 }
  0xec   :  { %v261_v55 = vadd.f32 %v260_v53, %v2006_v60  ;;  %v363_v56 = vadd.f32 %v362_v54, %v2012_v7  ;;  %v262_v57 = vpop.f32.mrb[9].mxu1  ;;  %v364_v61 = vpop.f32.mrb[9].mxu0 }
  0xed   :  { %v263_v62 = vadd.f32 %v262_v57, %v2006_v60  ;;  %v365_v63 = vadd.f32 %v364_v61, %v2012_v7  ;;  %v387_v0 = vadd.f32 %v380_v52, %v379_v50  ;;  %v279_v1 = vadd.f32 %v270_v51, %v269_v49 }
  0xee   :  { %v271_v2 = vmax.f32 %v261_v55, 0.0  ;;  %v381_v4 = vmax.f32 %v363_v56, 0.0 }
  0xef   :  { %v272_v5 = vmax.f32 %v263_v62, 0.0  ;;  %v382_v6 = vmax.f32 %v365_v63, 0.0  ;;  %v368_v8 = vpop.f32.mrb[10].mxu0  ;;  %v470_v9 = vpop.f32.mrb[10].mxu1  ;;  %388 = vadd.xlane.f32.xlu1 %v387_v0  ;;  %280 = vadd.xlane.f32.xlu0 %v279_v1 }
  0xf0   :  { %v369_v10 = vadd.f32 %v368_v8, %v2002_v58  ;;  %v471_v11 = vadd.f32 %v470_v9, %v2004_v59  ;;  %v370_v12 = vpop.f32.mrb[11].mxu0  ;;  %v472_v13 = vpop.f32.mrb[11].mxu1 }
  0xf1   :  { %v371_v14 = vadd.f32 %v370_v12, %v2002_v58  ;;  %v473_v15 = vadd.f32 %v472_v13, %v2004_v59  ;;  %v390_v16 = vadd.f32 %v382_v6, %v381_v4  ;;  %v282_v17 = vadd.f32 %v272_v5, %v271_v2 }
  0xf2   :  { %v383_v18 = vmax.f32 %v369_v10, 0.0  ;;  %v493_v19 = vmax.f32 %v471_v11, 0.0 }
  0xf3   :  { %v384_v20 = vmax.f32 %v371_v14, 0.0  ;;  %v494_v21 = vmax.f32 %v473_v15, 0.0  ;;  %v374_v22 = vpop.f32.mrb[12].mxu0  ;;  %v476_v23 = vpop.f32.mrb[12].mxu1  ;;  %391 = vadd.xlane.f32.xlu0 %v390_v16 }
  0xf4   :  { %v375_v24 = vadd.f32 %v374_v22, %v2006_v60  ;;  %v477_v25 = vadd.f32 %v476_v23, %v2012_v7  ;;  %v376_v26 = vpop.f32.mrb[13].mxu0  ;;  %v478_v27 = vpop.f32.mrb[13].mxu1 }
  0xf5   :  { %v377_v28 = vadd.f32 %v376_v26, %v2006_v60  ;;  %v479_v29 = vadd.f32 %v478_v27, %v2012_v7  ;;  %v393_v30 = vadd.f32 %v384_v20, %v383_v18  ;;  %v501_v31 = vadd.f32 %v494_v21, %v493_v19 }
  0xf6   :  { %v385_v32 = vmax.f32 %v375_v24, 0.0  ;;  %v495_v33 = vmax.f32 %v477_v25, 0.0 }
  0xf7   :  { %v386_v34 = vmax.f32 %v377_v28, 0.0  ;;  %v496_v35 = vmax.f32 %v479_v29, 0.0  ;;  %v482_v36 = vpop.f32.mrb[14].mxu1  ;;  %v584_v37 = vpop.f32.mrb[14].mxu0  ;;  %394 = vadd.xlane.f32.xlu1 %v393_v30  ;;  %283 = vadd.xlane.f32.xlu0 %v282_v17 }
  0xf8   :  { %v483_v38 = vadd.f32 %v482_v36, %v2002_v58  ;;  %v585_v39 = vadd.f32 %v584_v37, %v2004_v59  ;;  %v484_v40 = vpop.f32.mrb[15].mxu1  ;;  %v586_v41 = vpop.f32.mrb[15].mxu0 }
  0xf9   :  { %v485_v42 = vadd.f32 %v484_v40, %v2002_v58  ;;  %v587_v43 = vadd.f32 %v586_v41, %v2004_v59  ;;  %v504_v44 = vadd.f32 %v496_v35, %v495_v33  ;;  %v396_v45 = vadd.f32 %v386_v34, %v385_v32 }
  0xfa   :  { %v497_v46 = vmax.f32 %v483_v38, 0.0  ;;  %v607_v47 = vmax.f32 %v585_v39, 0.0 }
  0xfb   :  { %v498_v48 = vmax.f32 %v485_v42, 0.0  ;;  %v608_v49 = vmax.f32 %v587_v43, 0.0  ;;  %v488_v50 = vpop.f32.mrb[16].mxu1  ;;  %v590_v51 = vpop.f32.mrb[16].mxu0  ;;  %505 = vadd.xlane.f32.xlu1 %v504_v44  ;;  %502 = vadd.xlane.f32.xlu0 %v501_v31 }
  0xfc   :  { %v489_v52 = vadd.f32 %v488_v50, %v2006_v60  ;;  %v591_v53 = vadd.f32 %v590_v51, %v2012_v7  ;;  %v490_v54 = vpop.f32.mrb[17].mxu1  ;;  %v592_v55 = vpop.f32.mrb[17].mxu0 }
  0xfd   :  { %v491_v56 = vadd.f32 %v490_v54, %v2006_v60  ;;  %v593_v57 = vadd.f32 %v592_v55, %v2012_v7  ;;  %v507_v61 = vadd.f32 %v498_v48, %v497_v46  ;;  %v615_v62 = vadd.f32 %v608_v49, %v607_v47 }
  0xfe   :  { %v499_v63 = vmax.f32 %v489_v52, 0.0  ;;  %v609_v0 = vmax.f32 %v591_v53, 0.0 }
  0xff   :  { %v500_v1 = vmax.f32 %v491_v56, 0.0  ;;  %v610_v2 = vmax.f32 %v593_v57, 0.0  ;;  %v596_v4 = vpop.f32.mrb[18].mxu0  ;;  %v698_v5 = vpop.f32.mrb[18].mxu1  ;;  %508 = vadd.xlane.f32.xlu1 %v507_v61  ;;  %397 = vadd.xlane.f32.xlu0 %v396_v45 }
 0x100   :  { %v597_v6 = vadd.f32 %v596_v4, %v2002_v58  ;;  %v699_v8 = vadd.f32 %v698_v5, %v2004_v59  ;;  %v598_v9 = vpop.f32.mrb[19].mxu0  ;;  %v700_v10 = vpop.f32.mrb[19].mxu1 }
 0x101   :  { %v599_v11 = vadd.f32 %v598_v9, %v2002_v58  ;;  %v701_v12 = vadd.f32 %v700_v10, %v2004_v59  ;;  %v618_v13 = vadd.f32 %v610_v2, %v609_v0  ;;  %v510_v14 = vadd.f32 %v500_v1, %v499_v63 }
 0x102   :  { %v611_v15 = vmax.f32 %v597_v6, 0.0  ;;  %v721_v16 = vmax.f32 %v699_v8, 0.0 }
 0x103   :  { %v612_v17 = vmax.f32 %v599_v11, 0.0  ;;  %v722_v18 = vmax.f32 %v701_v12, 0.0  ;;  %v602_v19 = vpop.f32.mrb[20].mxu0  ;;  %v704_v20 = vpop.f32.mrb[20].mxu1  ;;  %619 = vadd.xlane.f32.xlu1 %v618_v13  ;;  %616 = vadd.xlane.f32.xlu0 %v615_v62 }
 0x104   :  { %v603_v21 = vadd.f32 %v602_v19, %v2006_v60  ;;  %v705_v22 = vadd.f32 %v704_v20, %v2012_v7  ;;  %v604_v23 = vpop.f32.mrb[21].mxu0  ;;  %v706_v24 = vpop.f32.mrb[21].mxu1 }
 0x105   :  { %v605_v25 = vadd.f32 %v604_v23, %v2006_v60  ;;  %v707_v26 = vadd.f32 %v706_v24, %v2012_v7  ;;  %v621_v27 = vadd.f32 %v612_v17, %v611_v15  ;;  %v729_v28 = vadd.f32 %v722_v18, %v721_v16 }
 0x106   :  { %v613_v29 = vmax.f32 %v603_v21, 0.0  ;;  %v723_v30 = vmax.f32 %v705_v22, 0.0 }
 0x107   :  { %v614_v31 = vmax.f32 %v605_v25, 0.0  ;;  %v724_v32 = vmax.f32 %v707_v26, 0.0  ;;  %v710_v33 = vpop.f32.mrb[22].mxu1  ;;  %v812_v34 = vpop.f32.mrb[22].mxu0  ;;  %622 = vadd.xlane.f32.xlu1 %v621_v27  ;;  %511 = vadd.xlane.f32.xlu0 %v510_v14 }
 0x108   :  { %v711_v35 = vadd.f32 %v710_v33, %v2002_v58  ;;  %v813_v36 = vadd.f32 %v812_v34, %v2004_v59  ;;  %v712_v37 = vpop.f32.mrb[23].mxu1  ;;  %v814_v38 = vpop.f32.mrb[23].mxu0 }
 0x109   :  { %v713_v39 = vadd.f32 %v712_v37, %v2002_v58  ;;  %v815_v40 = vadd.f32 %v814_v38, %v2004_v59  ;;  %v732_v41 = vadd.f32 %v724_v32, %v723_v30  ;;  %v624_v42 = vadd.f32 %v614_v31, %v613_v29 }
 0x10a   :  { %v725_v43 = vmax.f32 %v711_v35, 0.0  ;;  %v835_v44 = vmax.f32 %v813_v36, 0.0 }
 0x10b   :  { %v726_v45 = vmax.f32 %v713_v39, 0.0  ;;  %v836_v46 = vmax.f32 %v815_v40, 0.0  ;;  %v716_v47 = vpop.f32.mrb[24].mxu1  ;;  %v818_v48 = vpop.f32.mrb[24].mxu0  ;;  %733 = vadd.xlane.f32.xlu1 %v732_v41  ;;  %730 = vadd.xlane.f32.xlu0 %v729_v28 }
 0x10c   :  { %v717_v49 = vadd.f32 %v716_v47, %v2006_v60  ;;  %v819_v50 = vadd.f32 %v818_v48, %v2012_v7  ;;  %v718_v51 = vpop.f32.mrb[25].mxu1  ;;  %v820_v52 = vpop.f32.mrb[25].mxu0  ;;  %v1186_v47 = vld [vmem:[%s2345_s3 + $0x18] sm:$0xff]  ;;  %v1196_v48 = vld [vmem:[%s2345_s3 + $0x68] sm:$0xff] }
 0x10d   :  { %v719_v53 = vadd.f32 %v718_v51, %v2006_v60  ;;  %v821_v54 = vadd.f32 %v820_v52, %v2012_v7  ;;  %v735_v55 = vadd.f32 %v726_v45, %v725_v43  ;;  %v843_v56 = vadd.f32 %v836_v46, %v835_v44  ;;  %v1194_v44 = vld [vmem:[%s2345_s3 + $0x58] sm:$0xff]  ;;  %v1183_v45 = vld [vmem:[%s2345_s3] sm:$0xff]  ;;  %v1193_v46 = vld [vmem:[%s2345_s3 + $0x50] sm:$0xff] }
 0x10e   :  { %v727_v57 = vmax.f32 %v717_v49, 0.0  ;;  %v837_v61 = vmax.f32 %v819_v50, 0.0  ;;  %v1705_v49 = vpack.c.bf16 %v1193_v46, %v1183_v45  ;;  %v1711_v50 = vpack.c.bf16 %v1196_v48, %v1186_v47  ;;  %v1185_v51 = vld [vmem:[%s2345_s3 + $0x10] sm:$0xff]  ;;  %v1195_v52 = vld [vmem:[%s2345_s3 + $0x60] sm:$0xff] }
 0x10f   :  { %v728_v62 = vmax.f32 %v719_v53, 0.0  ;;  %v838_v63 = vmax.f32 %v821_v54, 0.0  ;;  %v824_v0 = vpop.f32.mrb[26].mxu0  ;;  %v926_v1 = vpop.f32.mrb[26].mxu1  ;;  %736 = vadd.xlane.f32.xlu1 %v735_v55  ;;  %625 = vadd.xlane.f32.xlu0 %v624_v42  ;;  %v1713_v53 = vpack.c.bf16 %v1195_v52, %v1185_v51  ;;  %v1204_v54 = vld [vmem:[%s2345_s3 + $0xa8] sm:$0xff]  ;;  %v1214_v55 = vld [vmem:[%s2345_s3 + $0xf8] sm:$0xff] }
 0x110   :  { %v825_v2 = vadd.f32 %v824_v0, %v2002_v58  ;;  %v927_v4 = vadd.f32 %v926_v1, %v2004_v59  ;;  %v826_v5 = vpop.f32.mrb[27].mxu0  ;;  %v928_v6 = vpop.f32.mrb[27].mxu1  ;;  %1712 = vmatprep.subr.bf16.mxu1 %v1711_v50 }
 0x111   :  { %v827_v8 = vadd.f32 %v826_v5, %v2002_v58  ;;  %v929_v9 = vadd.f32 %v928_v6, %v2004_v59  ;;  %v846_v10 = vadd.f32 %v838_v63, %v837_v61  ;;  %v738_v11 = vadd.f32 %v728_v62, %v727_v57  ;;  %1714 = vmatpush1.bf16.msra.mxu1 %v1713_v53  ;;  %v1203_v61 = vld [vmem:[%s2345_s3 + $0xa0] sm:$0xff]  ;;  %v1213_v62 = vld [vmem:[%s2345_s3 + $0xf0] sm:$0xff]  ;;  %v1216_v63 = vld [vmem:[%s2345_s3 + $0x108] sm:$0xff] }
 0x112   :  { %v839_v12 = vmax.f32 %v825_v2, 0.0  ;;  %v949_v13 = vmax.f32 %v927_v4, 0.0  ;;  %v1707_v57 = vpack.c.bf16 %v1214_v55, %v1204_v54  ;;  %v1709_v0 = vpack.c.bf16 %v1213_v62, %v1203_v61  ;;  %v1205_v2 = vld [vmem:[%s2345_s3 + $0xb0] sm:$0xff]  ;;  %v1215_v4 = vld [vmem:[%s2345_s3 + $0x100] sm:$0xff]  ;;  %v1188_v6 = vld [vmem:[%s2345_s3 + $0x28] sm:$0xff] }
 0x113   :  { %v840_v14 = vmax.f32 %v827_v8, 0.0  ;;  %v950_v15 = vmax.f32 %v929_v9, 0.0  ;;  %v830_v16 = vpop.f32.mrb[28].mxu0  ;;  %v932_v17 = vpop.f32.mrb[28].mxu1  ;;  %847 = vadd.xlane.f32.xlu1 %v846_v10  ;;  %844 = vadd.xlane.f32.xlu0 %v843_v56  ;;  %v1206_v56 = vld [vmem:[%s2345_s3 + $0xb8] sm:$0xff]  ;;  %v1717_v5 = vpack.c.bf16 %v1215_v4, %v1205_v2 }
 0x114   :  { %v831_v18 = vadd.f32 %v830_v16, %v2006_v60  ;;  %v933_v19 = vadd.f32 %v932_v17, %v2012_v7  ;;  %v832_v20 = vpop.f32.mrb[29].mxu0  ;;  %v934_v21 = vpop.f32.mrb[29].mxu1  ;;  %v1715_v1 = vpack.c.bf16 %v1216_v63, %v1206_v56  ;;  %v1198_v8 = vld [vmem:[%s2345_s3 + $0x78] sm:$0xff] }
 0x115   :  { %v833_v22 = vadd.f32 %v832_v20, %v2006_v60  ;;  %v935_v59 = vadd.f32 %v934_v21, %v2012_v7  ;;  %v849_v23 = vadd.f32 %v840_v14, %v839_v12  ;;  %v957_v24 = vadd.f32 %v950_v15, %v949_v13  ;;  %v1190_v9 = vld [vmem:[%s2345_s3 + $0x38] sm:$0xff] }
 0x116   :  { %v841_v25 = vmax.f32 %v831_v18, 0.0  ;;  %v951_v26 = vmax.f32 %v933_v19, 0.0  ;;  %1716 = vmatprep.subr.bf16.mxu1 %v1715_v1  ;;  %v1719_v10 = vpack.c.bf16 %v1198_v8, %v1188_v6 }
 0x117   :  { %v842_v27 = vmax.f32 %v833_v22, 0.0  ;;  %v952_v28 = vmax.f32 %v935_v59, 0.0  ;;  %v938_v29 = vpop.f32.mrb[30].mxu1  ;;  %850 = vadd.xlane.f32.xlu1 %v849_v23  ;;  %739 = vadd.xlane.f32.xlu0 %v738_v11  ;;  %v1200_v11 = vld [vmem:[%s2345_s3 + $0x88] sm:$0xff] }
 0x118   :  { %v939_v30 = vadd.f32 %v938_v29, %v2002_v58  ;;  %v940_v31 = vpop.f32.mrb[31].mxu1  ;;  %1718 = vmatpush1.bf16.msra.mxu1 %v1717_v5  ;;  %v1727_v12 = vpack.c.bf16 %v1200_v11, %v1190_v9 }
 0x119   :  { %v941_v32 = vadd.f32 %v940_v31, %v2002_v58  ;;  %v960_v33 = vadd.f32 %v952_v28, %v951_v26  ;;  %v852_v34 = vadd.f32 %v842_v27, %v841_v25  ;;  %v1184_v58 = vld [vmem:[%s2345_s3 + $0x8] sm:$0xff]  ;;  %v973_v27 = vlaneseq }
 0x11a   :  { %v953_v35 = vmax.f32 %v939_v30, 0.0  ;;  %1728 = vmatprep.subr.bf16.mxu1 %v1727_v12 }
 0x11b   :  { %v954_v36 = vmax.f32 %v941_v32, 0.0  ;;  %v944_v37 = vpop.f32.mrb[32].mxu1  ;;  %961 = vadd.xlane.f32.xlu1 %v960_v33  ;;  %958 = vadd.xlane.f32.xlu0 %v957_v24  ;;  %v974_v30 = vand.u32 127, %v973_v27 }
 0x11c   :  { %v945_v7 = vadd.f32 %v944_v37, %v2006_v60  ;;  %v946_v38 = vpop.f32.mrb[33].mxu1 }
 0x11d   :  { %v947_v39 = vadd.f32 %v946_v38, %v2006_v60  ;;  %v963_v40 = vadd.f32 %v954_v36, %v953_v35  ;;  %v1703_v60 = vpack.c.bf16 %v1194_v44, %v1184_v58  ;;  %v979_v33 = vadd.s32 4294967288, %v974_v30 }
 0x11e   :  { %v955_v41 = vmax.f32 %v945_v7, 0.0  ;;  %v976_v35 = vshrl.u32 %v973_v27, 7 }
 0x11f   :  { %v956_v42 = vmax.f32 %v947_v39, 0.0  ;;  %964 = vadd.xlane.f32.xlu1 %v963_v40  ;;  %853 = vadd.xlane.f32.xlu0 %v852_v34  ;;  %v986_v34 = vadd.s32 4294967280, %v974_v30  ;;  %v993_v39 = vadd.s32 4294967272, %v974_v30 }
 0x120   :  { %1704 = vmatprep.subr.bf16.mxu0 %v1703_v60  ;;  %v2156_v7 = vsub.s32 %v979_v33, %v976_v35  ;;  %v2160_v40 = vsub.s32 %v974_v30, %v976_v35 }
 0x121   :  { %v966_v43 = vadd.f32 %v956_v42, %v955_v41  ;;  %1706 = vmatpush1.bf16.msra.mxu0 %v1705_v49  ;;  %v2158_v38 = vsub.s32 %v986_v34, %v976_v35  ;;  %v2168_v44 = vsub.s32 %v993_v39, %v976_v35 }
 0x122   :  { %1708 = vmatprep.subr.bf16.mxu0 %v1707_v57 }
 0x123   :  { %967 = vadd.xlane.f32.xlu0 %v966_v43 }
 0x125   :  { %1710 = vmatpush1.bf16.msra.mxu0 %v1709_v0 }
 0x126   :  { %1720 = vmatprep.subr.bf16.mxu0 %v1719_v10 }
 0x170   :  { %v170_v13 = vpop.xlane.xlu1 %169  ;;  %v161_v14 = vpop.xlane.xlu0 %160 }
 0x171   :  { %v978_v45 = vrot.slane %v161_v14, %v2160_v40  ;;  %v997_v53 = vrot.slane %v170_v13, %v2168_v44 }
 0x174   :  { %v164_v15 = vpop.xlane.xlu1 %163  ;;  %v275_v16 = vpop.xlane.xlu0 %274 }
 0x175   :  { %v983_v43 = vrot.slane %v164_v15, %v2156_v7  ;;  %v1008_v49 = vrot.slane %v275_v16, %v2160_v40 }
 0x177   :  { %v985_v48 = vsel %vm984_vm1, %v983_v43, %v978_v45  ;;  %v1189_v45 = vld [vmem:[%s2345_s3 + $0x30] sm:$0xff] }
 0x178   :  { %v278_v17 = vpop.xlane.xlu0 %277  ;;  %v167_v18 = vpop.xlane.xlu1 %166 }
 0x179   :  { %v990_v58 = vrot.slane %v167_v18, %v2158_v38  ;;  %v1012_v60 = vrot.slane %v278_v17, %v2156_v7 }
 0x17b   :  { %v992_v51 = vsel %vm991_vm2, %v990_v58, %v985_v48  ;;  %v1013_v54 = vsel %vm984_vm1, %v1012_v60, %v1008_v49  ;;  %v1208_v60 = vld [vmem:[%s2345_s3 + $0xc8] sm:$0xff]  ;;  %v1218_v49 = vld [vmem:[%s2345_s3 + $0x118] sm:$0xff] }
 0x17c   :  { %v281_v19 = vpop.xlane.xlu0 %280  ;;  %v389_v20 = vpop.xlane.xlu1 %388  ;;  %v999_v1 = vsel %vm998_vm3, %v997_v53, %v992_v51  ;;  %v1220_v51 = vld [vmem:[%s2345_s3 + $0x128] sm:$0xff] }
 0x17d   :  { %v1017_v50 = vrot.slane %v281_v19, %v2158_v38  ;;  %v1032_v61 = vrot.slane %v389_v20, %v2160_v40 }
 0x17f   :  { %v1018_v2 = vsel %vm991_vm2, %v1017_v50, %v1013_v54  ;;  %v1210_v50 = vld [vmem:[%s2345_s3 + $0xd8] sm:$0xff] }
 0x180   :  { %v392_v21 = vpop.xlane.xlu0 %391 }
 0x181   :  { %v1036_v52 = vrot.slane %v392_v21, %v2156_v7 }
 0x183   :  { %v1037_v4 = vsel %vm984_vm1, %v1036_v52, %v1032_v61 }
 0x184   :  { %v395_v22 = vpop.xlane.xlu1 %394  ;;  %v2134_v59 = vpop.xlane.xlu0 %283 }
 0x185   :  { %v1041_v55 = vrot.slane %v395_v22, %v2158_v38  ;;  %v1022_v62 = vrot.slane %v2134_v59, %v2168_v44 }
 0x187   :  { %v1042_v9 = vsel %vm991_vm2, %v1041_v55, %v1037_v4  ;;  %v1023_v15 = vsel %vm998_vm3, %v1022_v62, %v1018_v2  ;;  %v1207_v62 = vld [vmem:[%s2345_s3 + $0xc0] sm:$0xff]  ;;  %v1731_v2 = vpack.c.bf16 %v1220_v51, %v1210_v50  ;;  %v1209_v4 = vld [vmem:[%s2345_s3 + $0xd0] sm:$0xff] }
 0x188   :  { %v2136_v23 = vpop.xlane.xlu1 %505  ;;  %v2138_v24 = vpop.xlane.xlu0 %502 }
 0x189   :  { %v1060_v63 = vrot.slane %v2136_v23, %v2156_v7  ;;  %v1056_v0 = vrot.slane %v2138_v24, %v2160_v40 }
 0x18b   :  { %v1061_v16 = vsel %vm984_vm1, %v1060_v63, %v1056_v0 }
 0x18c   :  { %v2140_v25 = vpop.xlane.xlu1 %508  ;;  %v2142_v26 = vpop.xlane.xlu0 %397 }
 0x18d   :  { %v1065_v5 = vrot.slane %v2140_v25, %v2158_v38  ;;  %v1046_v10 = vrot.slane %v2142_v26, %v2168_v44  ;;  %v1170_v26 = vsel %vm1169_vm4, %v999_v1, %v1023_v15  ;;  %v1723_v1 = vpack.c.bf16 %v1218_v49, %v1208_v60  ;;  %v1212_v15 = vld [vmem:[%s2345_s3 + $0xe8] sm:$0xff] }
 0x18f   :  { %v1066_v59 = vsel %vm991_vm2, %v1065_v5, %v1061_v16  ;;  %v1047_v27 = vsel %vm998_vm3, %v1046_v10, %v1042_v9  ;;  %v1219_v5 = vld [vmem:[%s2345_s3 + $0x120] sm:$0xff]  ;;  %v1202_v9 = vld [vmem:[%s2345_s3 + $0x98] sm:$0xff] }
 0x190   :  { %v2144_v28 = vpop.xlane.xlu1 %619  ;;  %v2146_v29 = vpop.xlane.xlu0 %616  ;;  %v1222_v16 = vld [vmem:[%s2345_s3 + $0x138] sm:$0xff] }
 0x191   :  { %v1084_v6 = vrot.slane %v2144_v28, %v2156_v7  ;;  %v1080_v8 = vrot.slane %v2146_v29, %v2160_v40 }
 0x193   :  { %v1085_v23 = vsel %vm984_vm1, %v1084_v6, %v1080_v8  ;;  %v1192_v8 = vld [vmem:[%s2345_s3 + $0x48] sm:$0xff] }
 0x194   :  { %v2148_v31 = vpop.xlane.xlu1 %622  ;;  %v2150_v32 = vpop.xlane.xlu0 %511 }
 0x195   :  { %v1089_v11 = vrot.slane %v2148_v31, %v2158_v38  ;;  %v1070_v12 = vrot.slane %v2150_v32, %v2168_v44 }
 0x197   :  { %v1090_v28 = vsel %vm991_vm2, %v1089_v11, %v1085_v23  ;;  %v1071_v29 = vsel %vm998_vm3, %v1070_v12, %v1066_v59  ;;  %v1733_v11 = vpack.c.bf16 %v1219_v5, %v1209_v4  ;;  %v1735_v12 = vpack.c.bf16 %v1202_v9, %v1192_v8 }
 0x198   :  { %v2152_v36 = vpop.xlane.xlu1 %733  ;;  %v2154_v37 = vpop.xlane.xlu0 %730 }
 0x199   :  { %v1108_v17 = vrot.slane %v2152_v36, %v2156_v7  ;;  %v1104_v18 = vrot.slane %v2154_v37, %v2160_v40 }
 0x19b   :  { %v1109_v32 = vsel %vm984_vm1, %v1108_v17, %v1104_v18  ;;  %v1739_v18 = vpack.c.bf16 %v1222_v16, %v1212_v15 }
 0x19c   :  { %v2162_v41 = vpop.xlane.xlu1 %736  ;;  %v2164_v42 = vpop.xlane.xlu0 %625 }
 0x19d   :  { %v1113_v19 = vrot.slane %v2162_v41, %v2158_v38  ;;  %v1094_v20 = vrot.slane %v2164_v42, %v2168_v44  ;;  %v1187_v42 = vld [vmem:[%s2345_s3 + $0x20] sm:$0xff] }
 0x19f   :  { %v1114_v36 = vsel %vm991_vm2, %v1113_v19, %v1109_v32  ;;  %v1095_v37 = vsel %vm998_vm3, %v1094_v20, %v1090_v28  ;;  %v1211_v19 = vld [vmem:[%s2345_s3 + $0xe0] sm:$0xff]  ;;  %v1221_v20 = vld [vmem:[%s2345_s3 + $0x130] sm:$0xff] }
 0x1a0   :  { %v848_v46 = vpop.xlane.xlu1 %847  ;;  %v845_v47 = vpop.xlane.xlu0 %844 }
 0x1a1   :  { %v1132_v21 = vrot.slane %v848_v46, %v2156_v7  ;;  %v1128_v22 = vrot.slane %v845_v47, %v2160_v40 }
 0x1a3   :  { %v1133_v39 = vsel %vm984_vm1, %v1132_v21, %v1128_v22  ;;  %v1741_v21 = vpack.c.bf16 %v1221_v20, %v1211_v19 }
 0x1a4   :  { %v851_v56 = vpop.xlane.xlu1 %850  ;;  %v740_v57 = vpop.xlane.xlu0 %739 }
 0x1a5   :  { %v1137_v24 = vrot.slane %v851_v56, %v2158_v38  ;;  %v1118_v25 = vrot.slane %v740_v57, %v2168_v44 }
 0x1a7   :  { %v1138_v43 = vsel %vm991_vm2, %v1137_v24, %v1133_v39  ;;  %v1119_v58 = vsel %vm998_vm3, %v1118_v25, %v1114_v36 }
 0x1a8   :  { %v962_v13 = vpop.xlane.xlu1 %961  ;;  %v959_v14 = vpop.xlane.xlu0 %958 }
 0x1a9   :  { %v1156_v33 = vrot.slane %v962_v13, %v2156_v7  ;;  %v1152_v34 = vrot.slane %v959_v14, %v2160_v40  ;;  %v1197_v7 = vld [vmem:[%s2345_s3 + $0x70] sm:$0xff]  ;;  %v1172_v40 = vsel %vm1171_vm5, %v1170_v26, %v1047_v27  ;;  %v1191_v13 = vld [vmem:[%s2345_s3 + $0x40] sm:$0xff] }
 0x1aa   :  { %v1174_v46 = vsel %vm1173_vm6, %v1172_v40, %v1071_v29  ;;  %v1721_v55 = vpack.c.bf16 %v1197_v7, %v1187_v42  ;;  %v1201_v14 = vld [vmem:[%s2345_s3 + $0x90] sm:$0xff] }
 0x1ab   :  { %v1176_v52 = vsel %vm1175_vm7, %v1174_v46, %v1095_v37  ;;  %v1157_v53 = vsel %vm984_vm1, %v1156_v33, %v1152_v34  ;;  %v1737_v17 = vpack.c.bf16 %v1201_v14, %v1191_v13 }
 0x1ac   :  { %v965_v30 = vpop.xlane.xlu1 %964  ;;  %v854_v31 = vpop.xlane.xlu0 %853  ;;  %v1178_v56 = vsel %vm1177_vm8, %v1176_v52, %v1119_v58 }
 0x1ad   :  { %v1142_v35 = vrot.slane %v854_v31, %v2168_v44  ;;  %v1161_v41 = vrot.slane %v965_v30, %v2158_v38  ;;  %v1199_v38 = vld [vmem:[%s2345_s3 + $0x80] sm:$0xff] }
 0x1ae   :  { %v1729_v61 = vpack.c.bf16 %v1199_v38, %v1189_v45 }
 0x1af   :  { %v1143_v47 = vsel %vm998_vm3, %v1142_v35, %v1138_v43  ;;  %v1162_v57 = vsel %vm991_vm2, %v1161_v41, %v1157_v53 }
 0x1b0   :  { %v968_v48 = vpop.xlane.xlu0 %967  ;;  %v1180_v63 = vsel %vm1179_vm9, %v1178_v56, %v1143_v47 }
 0x1b1   :  { %v1166_v54 = vrot.slane %v968_v48, %v2168_v44  ;;  %v1217_v44 = vld [vmem:[%s2345_s3 + $0x110] sm:$0xff] }
 0x1b2   :  { %v1725_v10 = vpack.c.bf16 %v1217_v44, %v1207_v62 }
 0x1b3   :  { %v1167_v0 = vsel %vm998_vm3, %v1166_v54, %v1162_v57 }
 0x1b4   :  { %v1182_v6 = vsel %vm1181_vm10, %v1180_v63, %v1167_v0 }
 0x1b5   :  { %1666 = vmatmul.mubr.msk.f32.vlgmr.msra.gmra.mrb[30].mxu0 %vm1223_vm11, %v1182_v6  ;;  %1667 = vmatmul.mubr.msk.f32.vlgmr.msra.gmra.mrb[34].mxu1 %vm1223_vm11, %v1182_v6 }
 0x1b6   :  { %1722 = vmatpush1.bf16.msra.mxu0 %v1721_v55  ;;  %1730 = vmatpush1.bf16.msra.mxu1 %v1729_v61 }
 0x1b7   :  { %1724 = vmatprep.subr.bf16.mxu0 %v1723_v1  ;;  %1732 = vmatprep.subr.bf16.mxu1 %v1731_v2 }
 0x1b8   :  { %1433 = vmatprep.mubr.f32.mxu0 %v1749_v3  ;;  %1504 = vmatprep.mubr.f32.mxu1 %v1749_v3 }
 0x1ba   :  { %1726 = vmatpush1.bf16.msra.mxu0 %v1725_v10  ;;  %1734 = vmatpush1.bf16.msra.mxu1 %v1733_v11 }
 0x1bb   :  { %1736 = vmatprep.subr.bf16.mxu0 %v1735_v12 }
 0x1bd   :  { %1668 = vmatmul.mubr.msk.f32.vlgmr.msra.gmra.mrb[32].mxu0 %vm1223_vm11, %v1182_v6  ;;  %1669 = vmatmul.mubr.msk.f32.vlgmr.msra.gmra.mrb[36].mxu1 %vm1223_vm11, %v1182_v6 }
 0x1be   :  { %1738 = vmatpush1.bf16.msra.mxu0 %v1737_v17  ;;  %1575 = vmatprep.mubr.f32.mxu0 %v1749_v3 }
 0x1bf   :  { %1740 = vmatprep.subr.bf16.mxu0 %v1739_v18 }
 0x1c2   :  { %1742 = vmatpush1.bf16.msra.mxu0 %v1741_v21 }
 0x1c5   :  { %1670 = vmatmul.mubr.msk.f32.vlgmr.msra.gmra.mrb[34].mxu0 %vm1223_vm11, %v1182_v6 }
 0x288   :  { %v1293_v22 = vpop.f32.mrb[30].mxu0  ;;  %v1364_v59 = vpop.f32.mrb[34].mxu1 }
 0x289   :  { %v1582_v23 = vmax.f32 %v1293_v22, 0.0  ;;  %v1584_v24 = vmax.f32 %v1364_v59, 0.0  ;;  %v1295_v25 = vpop.f32.mrb[31].mxu0  ;;  %v1366_v26 = vpop.f32.mrb[35].mxu1 }
 0x28a   :  { %v1583_v27 = vmax.f32 %v1295_v25, 0.0  ;;  %v1585_v28 = vmax.f32 %v1366_v26, 0.0 }
 0x28b   :  { %1592 = vst [vmem:[%s2346_s4] sm:$0xff] %v1582_v23  ;;  %1594 = vst [vmem:[%s2346_s4 + $0x10] sm:$0xff] %v1584_v24 }
 0x28c   :  { %1593 = vst [vmem:[%s2346_s4 + $0x8] sm:$0xff] %v1583_v27  ;;  %1595 = vst [vmem:[%s2346_s4 + $0x18] sm:$0xff] %v1585_v28 }
 0x290   :  { %v1435_v3 = vpop.f32.mrb[32].mxu0  ;;  %v1506_v29 = vpop.f32.mrb[36].mxu1 }
 0x291   :  { %v1586_v30 = vmax.f32 %v1435_v3, 0.0  ;;  %v1588_v31 = vmax.f32 %v1506_v29, 0.0  ;;  %v1437_v32 = vpop.f32.mrb[33].mxu0  ;;  %v1508_v33 = vpop.f32.mrb[37].mxu1 }
 0x292   :  { %v1587_v34 = vmax.f32 %v1437_v32, 0.0  ;;  %v1589_v35 = vmax.f32 %v1508_v33, 0.0 }
 0x293   :  { %1596 = vst [vmem:[%s2346_s4 + $0x20] sm:$0xff] %v1586_v30  ;;  %1598 = vst [vmem:[%s2346_s4 + $0x30] sm:$0xff] %v1588_v31 }
 0x294   :  { %1597 = vst [vmem:[%s2346_s4 + $0x28] sm:$0xff] %v1587_v34  ;;  %1599 = vst [vmem:[%s2346_s4 + $0x38] sm:$0xff] %v1589_v35 }
 0x298   :  { %v1577_v36 = vpop.f32.mrb[34].mxu0 }
 0x299   :  { %v1590_v37 = vmax.f32 %v1577_v36, 0.0  ;;  %v1579_v39 = vpop.f32.mrb[35].mxu0 }
 0x29a   :  { %v1591_v41 = vmax.f32 %v1579_v39, 0.0 }
 0x29b   :  { %1600 = vst [vmem:[%s2346_s4 + $0x40] sm:$0xff] %v1590_v37 }
 0x29c   :  { %1601 = vst [vmem:[%s2346_s4 + $0x48] sm:$0xff] %v1591_v41 }

</bundles_post_ra>
